<compile_context>
chip_gen: v7x
topology: tpu7x:2x2x1
jax: 0.10.0
libtpu: 0.0.40
codegen_flags: <defaults>
</compile_context>

<pallas_src>
import functools

import jax
import jax.numpy as jnp
from jax.experimental import pallas as pl
from jax.experimental.pallas import tpu as pltpu


def _chiral_node_s_kernel(x_ref, w_ref, bsum_ref, wf_ref, bf_ref, out_ref,
                          *, k, tb, n, h):
    """One grid step processes TB batch rows.

    x_ref    : (TB, N, H)   input block (compute dtype, e.g. bf16)
    w_ref    : (k*H, H)     k projection weights, transposed & stacked on the
                            contraction axis (compute dtype)
    bsum_ref : (1, H)       sum of the k projection biases (f32)
    wf_ref   : (H, H)       final linear weight, transposed (f32)
    bf_ref   : (1, H)       final linear bias (f32)
    out_ref  : (1, TB, H)   per-block output (f32)
    """
    m = n - k + 1

    x = x_ref[...]                                                     # (TB, N, H)
    # Shifted-window concat along the LANE axis; the single matmul then
    # contracts over k*H and its output is already summed_m (no shifted adds).
    x_cat = jnp.concatenate([x[:, i:i + m, :] for i in range(k)], axis=-1)  # (TB, m, k*H)
    acc = jnp.dot(x_cat.reshape(tb * m, k * h), w_ref[...],
                  preferred_element_type=jnp.float32)                  # (TB*m, H)
    acc = acc.reshape(tb, m, h) + bsum_ref[...]                        # fold k biases

    # ELU (alpha = 1.0) in f32: single EUP transcendental per element.
    elu = jnp.where(acc > 0, acc, jnp.exp(jnp.minimum(acc, 0.0)) - 1.0)

    # Linearity of the final Linear: reduce over the window positions first,
    # then one tiny f32 (TB, H) @ (H, H) matmul; bias applied m times -> m * b_f.
    s = jnp.sum(elu, axis=1)                                           # (TB, H), f32
    final = jnp.dot(s, wf_ref[...], preferred_element_type=jnp.float32)
    out_ref[0] = (final + jnp.float32(m) * bf_ref[...]).astype(out_ref.dtype)


def _pick_block_batch(b, n, h, itemsize):
    """Batch rows per grid step.

    Target an x block of ~2 MiB (HBM-roofline-friendly tile on v5e/v6e) and
    TB*N >= 256 rows to fill the MXU, but ALWAYS keep >= 8 grid steps
    (>= 4 per v7x TensorCore) so the auto-pipeline has iterations to overlap
    the HBM->VMEM DMA with compute: the step-count constraint wins over size.
    """
    if b <= 1:
        return 1
    tb = max(1, pl.cdiv(256, n))
    while tb < b and tb * n * h * itemsize < (2 << 20):
        tb *= 2
    tb = min(tb, b)
    min_steps = min(8, b)
    while tb > 1 and pl.cdiv(b, tb) < min_steps:
        tb = (tb + 1) // 2
    return tb


def chiral_node_network_type_s(x, params, *, k=2, use_state=False,
                               compute_dtype=jnp.bfloat16, block_batch=None):
    """Pallas implementation of ChiralNodeNetworkTypeS.forward.

    x: (B, N, H) float32.  Returns (B, H) float32.
    compute_dtype: dtype of the big MXU matmul inputs (bf16 by default;
    accumulation, ELU, the final matmul and the output stay f32).  Pass
    jnp.float32 for bit-faithful semantics.
    """
    B, N, H = x.shape
    m = N - k + 1
    assert m >= 1, "sequence length must be >= k"
    cdt = jnp.dtype(compute_dtype)

    wk_t = params["wk_t"]    # (k, H, H) pre-transposed (in, out)
    bk = params["bk"]        # (k, 1, H)
    wf_t = params["wf_t"]    # (H, H) pre-transposed
    bf = params["bf"]        # (1, H)

    # Lane-align the hidden dim: zero-pad H -> multiple of 128.  Padded input
    # lanes are zero, padded weight rows/cols are zero, padded biases are zero,
    # so padded output lanes are exactly 0 (ELU(0)=0) and are sliced off below.
    Hp = 128 * pl.cdiv(H, 128)
    if Hp != H:
        p = Hp - H
        x = jnp.pad(x, ((0, 0), (0, 0), (0, p)))
        wk_t = jnp.pad(wk_t, ((0, 0), (0, p), (0, p)))
        bk = jnp.pad(bk, ((0, 0), (0, 0), (0, p)))
        wf_t = jnp.pad(wf_t, ((0, p), (0, p)))
        bf = jnp.pad(bf, ((0, 0), (0, p)))

    # Stack the k projection weights along the CONTRACTION axis -> a single
    # (k*Hp, Hp) matmul (256-deep for k=2, H=128: matches the v6e/v7x MXU).
    w_stack = jnp.concatenate([wk_t[i] for i in range(k)], axis=0).astype(cdt)  # (k*Hp, Hp)
    bsum = jnp.sum(bk.astype(jnp.float32), axis=0)                              # (1, Hp)
    wf_f32 = wf_t.astype(jnp.float32)    # tiny final matmul kept fully f32
    bf_f32 = bf.astype(jnp.float32)
    xc = x.astype(cdt)

    tb = block_batch if block_batch is not None else _pick_block_batch(B, N, Hp, cdt.itemsize)
    grid = pl.cdiv(B, tb)
    bp = grid * tb
    if bp != B:
        xc = jnp.pad(xc, ((0, bp - B), (0, 0), (0, 0)))

    kernel = functools.partial(_chiral_node_s_kernel, k=k, tb=tb, n=N, h=Hp)

    # VMEM budget: double-buffered x/out blocks + (constant-index, still
    # double-buffered) weights, PLUS the per-step intermediates (x_cat in
    # compute dtype, f32 acc + elu), with ~1.5x headroom.  Capped at 56 MiB so
    # v7x's 64 MiB/TC VMEM keeps room for internal scratch.
    x_blk = tb * N * Hp * cdt.itemsize
    out_blk = tb * Hp * 4
    w_bytes = k * Hp * Hp * cdt.itemsize + Hp * Hp * 4 + 2 * Hp * 4
    inter = tb * m * k * Hp * cdt.itemsize + 2 * tb * m * Hp * 4
    need = 2 * (x_blk + out_blk) + 2 * w_bytes + inter
    vmem_limit = int(min(56 << 20, max(32 << 20, int(1.5 * need))))

    cost = pl.CostEstimate(
        flops=2 * bp * m * (k * Hp) * Hp + 2 * bp * Hp * Hp,
        transcendentals=bp * m * Hp,          # one exp per ELU element
        bytes_accessed=bp * N * Hp * cdt.itemsize + bp * Hp * 4
                       + k * Hp * Hp * cdt.itemsize + Hp * Hp * 4 + 2 * Hp * 4,
    )

    out = pl.pallas_call(
        kernel,
        out_shape=jax.ShapeDtypeStruct((grid, tb, Hp), jnp.float32),
        grid=(grid,),
        in_specs=[
            pl.BlockSpec((tb, N, Hp), lambda b: (b, 0, 0)),     # x: TB batch rows per step
            pl.BlockSpec((k * Hp, Hp), lambda b: (0, 0)),       # stacked k-layer weights
            pl.BlockSpec((1, Hp), lambda b: (0, 0)),            # sum of k-layer biases
            pl.BlockSpec((Hp, Hp), lambda b: (0, 0)),           # final linear weight (f32)
            pl.BlockSpec((1, Hp), lambda b: (0, 0)),            # final linear bias
        ],
        out_specs=pl.BlockSpec((1, tb, Hp), lambda b: (b, 0, 0)),
        compiler_params=pltpu.CompilerParams(
            dimension_semantics=("parallel",),
            vmem_limit_bytes=vmem_limit,
        ),
        cost_estimate=cost,
    )(xc, w_stack, bsum, wf_f32, bf_f32)

    out = out.reshape(bp, Hp)[:B, :H]

    if use_state:
        # Appending the state row before the final sum == adding state_layer(own_state).
        # TODO(synk): fold the (1,H)@(H,H) state projection into the kernel if it ever matters.
        state_row = params["own_state"] @ params["ws_t"] + params["bs"]   # (1, H)
        out = out + state_row.astype(out.dtype)
    return out


def chiral_node_network_type_s_ref(x, params, *, k=2, use_state=False):
    """Plain-JAX f32 reference mirroring the PyTorch forward exactly."""
    N = x.shape[-2]
    m = N - k + 1
    ys = [x @ params["wk_t"][i] + params["bk"][i] for i in range(k)]
    shifted = jnp.stack([y[..., i:i + m, :] for i, y in enumerate(ys)], axis=-2)
    summed = jnp.sum(shifted, axis=-2)
    elu = jnp.where(summed > 0, summed, jnp.expm1(summed))
    final = elu @ params["wf_t"] + params["bf"]
    if use_state:
        temp = params["own_state"] @ params["ws_t"] + params["bs"]
        temp = jnp.broadcast_to(temp, final.shape[:-2] + (1, final.shape[-1]))
        final = jnp.concatenate([final, temp], axis=-2)
    return jnp.sum(final, axis=-2)


def init_params(key, *, k=2, hidden_dim=128, use_state=False):
    """Deterministic parameter init (PyTorch Linear-style uniform bounds)."""
    bound = 1.0 / jnp.sqrt(hidden_dim)
    keys = jax.random.split(key, 8)
    wk = jax.random.uniform(keys[0], (k, hidden_dim, hidden_dim), jnp.float32, -bound, bound)
    bk = jax.random.uniform(keys[1], (k, 1, hidden_dim), jnp.float32, -bound, bound)
    wf = jax.random.uniform(keys[2], (hidden_dim, hidden_dim), jnp.float32, -bound, bound)
    bf = jax.random.uniform(keys[3], (1, hidden_dim), jnp.float32, -bound, bound)
    params = {
        # store weights transposed (in_dim, out_dim) so kernel does x @ W.T
        "wk_t": jnp.transpose(wk, (0, 2, 1)),
        "bk": bk,
        "wf_t": wf.T,
        "bf": bf,
    }
    if use_state:
        ws = jax.random.uniform(keys[4], (hidden_dim, hidden_dim), jnp.float32, -bound, bound)
        bs = jax.random.uniform(keys[5], (1, hidden_dim), jnp.float32, -bound, bound)
        own_state = jax.random.normal(keys[6], (1, hidden_dim), jnp.float32)
        params.update({"ws_t": ws.T, "bs": bs, "own_state": own_state})
    return params


if __name__ == "__main__":
    # Small shapes consistent with the module: batch=2, seq=8, hidden=32, k=2.
    B, N, H, K = 2, 8, 32, 2
    key = jax.random.PRNGKey(0)
    k_x, k_p = jax.random.split(key)
    x = jax.random.normal(k_x, (B, N, H), jnp.float32)

    for use_state in (False, True):
        params = init_params(k_p, k=K, hidden_dim=H, use_state=use_state)
        ref = chiral_node_network_type_s_ref(x, params, k=K, use_state=use_state)

        # Near-bit-faithful f32 path (same semantics as the PyTorch module).
        out_f32 = jax.block_until_ready(
            chiral_node_network_type_s(x, params, k=K, use_state=use_state,
                                       compute_dtype=jnp.float32))
        assert out_f32.shape == (B, H), out_f32.shape
        assert jnp.allclose(out_f32, ref, rtol=1e-4, atol=1e-4), \
            float(jnp.max(jnp.abs(out_f32 - ref)))

        # Performance path: bf16 matmul inputs, f32 accumulation/ELU/final matmul.
        out_bf16 = jax.block_until_ready(
            chiral_node_network_type_s(x, params, k=K, use_state=use_state,
                                       compute_dtype=jnp.bfloat16))
        assert out_bf16.shape == (B, H), out_bf16.shape
        assert jnp.allclose(out_bf16, ref, rtol=5e-2, atol=5e-2), \
            float(jnp.max(jnp.abs(out_bf16 - ref)))

    print("KERNEL_OK")
</pallas_src>

<mosaic_0001>
module attributes {stable_mosaic.version = 11 : i64} {
  func.func @_chiral_node_s_kernel(%arg0: i32, %arg1: memref<1x8x128xf32, #tpu.memory_space<vmem>>, %arg2: memref<256x128xf32, #tpu.memory_space<vmem>>, %arg3: memref<1x128xf32, #tpu.memory_space<vmem>>, %arg4: memref<128x128xf32, #tpu.memory_space<vmem>>, %arg5: memref<1x128xf32, #tpu.memory_space<vmem>>, %arg6: memref<1x1x128xf32, #tpu.memory_space<vmem>>) attributes {dimension_semantics = [#tpu.dimension_semantics<parallel>], iteration_bounds = array<i64: 2>, scalar_prefetch = 0 : i64, scratch_operands = 0 : i64, tpu.core_type = #tpu.core_type<tc>, window_params = [{transform_indices = @transform_0, window_bounds = array<i64: 1, 8, 128>}, {pipeline_mode = #tpu.pipeline_mode<synchronous>, transform_indices = @transform_1, window_bounds = array<i64: 256, 128>}, {pipeline_mode = #tpu.pipeline_mode<synchronous>, transform_indices = @transform_2, window_bounds = array<i64: 1, 128>}, {pipeline_mode = #tpu.pipeline_mode<synchronous>, transform_indices = @transform_3, window_bounds = array<i64: 128, 128>}, {pipeline_mode = #tpu.pipeline_mode<synchronous>, transform_indices = @transform_4, window_bounds = array<i64: 1, 128>}, {transform_indices = @transform_5, window_bounds = array<i64: 1, 1, 128>}]} {
    %c0 = arith.constant 0 : index
    %c0_0 = arith.constant 0 : index
    %c0_1 = arith.constant 0 : index
    %0 = vector.load %arg1[%c0, %c0_0, %c0_1] : memref<1x8x128xf32, #tpu.memory_space<vmem>>, vector<1x8x128xf32>
    %1 = vector.extract_strided_slice %0 {offsets = [0, 0, 0], sizes = [1, 7, 128], strides = [1, 1, 1]} : vector<1x8x128xf32> to vector<1x7x128xf32>
    %2 = vector.extract_strided_slice %0 {offsets = [0, 1, 0], sizes = [1, 7, 128], strides = [1, 1, 1]} : vector<1x8x128xf32> to vector<1x7x128xf32>
    %3 = tpu.concatenate %1, %2 in 2 : vector<1x7x128xf32>, vector<1x7x128xf32> -> vector<1x7x256xf32>
    %4 = vector.shape_cast %3 : vector<1x7x256xf32> to vector<7x256xf32>
    %c0_2 = arith.constant 0 : index
    %c0_3 = arith.constant 0 : index
    %5 = vector.load %arg2[%c0_2, %c0_3] : memref<256x128xf32, #tpu.memory_space<vmem>>, vector<256x128xf32>
    %cst = arith.constant dense<0.000000e+00> : vector<7x128xf32>
    %6 = tpu.matmul %4, %5, %cst {dimension_numbers = #tpu.dot_dimension_numbers<[1], [0], [0], [1], [0, 0, 1, 1], [], []>} : vector<7x256xf32>, vector<256x128xf32>, vector<7x128xf32> -> vector<7x128xf32>
    %7 = vector.shape_cast %6 : vector<7x128xf32> to vector<1x7x128xf32>
    %c0_4 = arith.constant 0 : index
    %c0_5 = arith.constant 0 : index
    %8 = vector.load %arg3[%c0_4, %c0_5] : memref<1x128xf32, #tpu.memory_space<vmem>>, vector<1x128xf32>
    %9 = vector.shape_cast %8 : vector<1x128xf32> to vector<1x1x128xf32>
    %10 = vector.broadcast %9 : vector<1x1x128xf32> to vector<1x7x128xf32>
    %11 = arith.addf %7, %10 : vector<1x7x128xf32>
    %cst_6 = arith.constant 0.000000e+00 : f32
    %12 = vector.broadcast %cst_6 : f32 to vector<1x7x128xf32>
    %13 = arith.cmpf ogt, %11, %12 : vector<1x7x128xf32>
    %cst_7 = arith.constant 0.000000e+00 : f32
    %14 = vector.broadcast %cst_7 : f32 to vector<1x7x128xf32>
    %15 = arith.minimumf %11, %14 : vector<1x7x128xf32>
    %16 = math.exp %15 : vector<1x7x128xf32>
    %cst_8 = arith.constant 1.000000e+00 : f32
    %17 = vector.broadcast %cst_8 : f32 to vector<1x7x128xf32>
    %18 = arith.subf %16, %17 : vector<1x7x128xf32>
    %19 = arith.select %13, %11, %18 : vector<1x7x128xi1>, vector<1x7x128xf32>
    %cst_9 = arith.constant dense<0.000000e+00> : vector<1x128xf32>
    %20 = vector.multi_reduction <add>, %19, %cst_9 [1] : vector<1x7x128xf32> to vector<1x128xf32>
    %c0_10 = arith.constant 0 : index
    %c0_11 = arith.constant 0 : index
    %21 = vector.load %arg4[%c0_10, %c0_11] : memref<128x128xf32, #tpu.memory_space<vmem>>, vector<128x128xf32>
    %cst_12 = arith.constant dense<0.000000e+00> : vector<1x128xf32>
    %22 = tpu.matmul %20, %21, %cst_12 {dimension_numbers = #tpu.dot_dimension_numbers<[1], [0], [0], [1], [0, 0, 1, 1], [], []>} : vector<1x128xf32>, vector<128x128xf32>, vector<1x128xf32> -> vector<1x128xf32>
    %c0_13 = arith.constant 0 : index
    %c0_14 = arith.constant 0 : index
    %23 = vector.load %arg5[%c0_13, %c0_14] : memref<1x128xf32, #tpu.memory_space<vmem>>, vector<1x128xf32>
    %cst_15 = arith.constant 7.000000e+00 : f32
    %24 = vector.broadcast %cst_15 : f32 to vector<1x128xf32>
    %25 = arith.mulf %24, %23 : vector<1x128xf32>
    %26 = arith.addf %22, %25 : vector<1x128xf32>
    %c0_16 = arith.constant 0 : index
    %c0_17 = arith.constant 0 : index
    %c0_18 = arith.constant 0 : index
    %27 = vector.load %arg6[%c0_16, %c0_17, %c0_18] : memref<1x1x128xf32, #tpu.memory_space<vmem>>, vector<1x1x128xf32>
    %28 = vector.shape_cast %27 : vector<1x1x128xf32> to vector<1x128xf32>
    %29 = vector.shape_cast %26 : vector<1x128xf32> to vector<1x1x128xf32>
    tpu.vector_store %arg6[%c0_16, %c0_17, %c0_18], %29 {strides = array<i32>} : memref<1x1x128xf32, #tpu.memory_space<vmem>>, vector<1x1x128xf32>,
    return
  }
  func.func @transform_0(%arg0: i32) -> (i32, i32, i32) {
    %c0_i32 = arith.constant 0 : i32
    %c0_i32_0 = arith.constant 0 : i32
    %c0_i32_1 = arith.constant 0 : i32
    return %arg0, %c0_i32, %c0_i32_0 : i32, i32, i32
  }
  func.func @transform_1(%arg0: i32) -> (i32, i32) {
    %c0_i32 = arith.constant 0 : i32
    %c0_i32_0 = arith.constant 0 : i32
    %c0_i32_1 = arith.constant 0 : i32
    return %c0_i32, %c0_i32_0 : i32, i32
  }
  func.func @transform_2(%arg0: i32) -> (i32, i32) {
    %c0_i32 = arith.constant 0 : i32
    %c0_i32_0 = arith.constant 0 : i32
    %c0_i32_1 = arith.constant 0 : i32
    return %c0_i32, %c0_i32_0 : i32, i32
  }
  func.func @transform_3(%arg0: i32) -> (i32, i32) {
    %c0_i32 = arith.constant 0 : i32
    %c0_i32_0 = arith.constant 0 : i32
    %c0_i32_1 = arith.constant 0 : i32
    return %c0_i32, %c0_i32_0 : i32, i32
  }
  func.func @transform_4(%arg0: i32) -> (i32, i32) {
    %c0_i32 = arith.constant 0 : i32
    %c0_i32_0 = arith.constant 0 : i32
    %c0_i32_1 = arith.constant 0 : i32
    return %c0_i32, %c0_i32_0 : i32, i32
  }
  func.func @transform_5(%arg0: i32) -> (i32, i32, i32) {
    %c0_i32 = arith.constant 0 : i32
    %c0_i32_0 = arith.constant 0 : i32
    %c0_i32_1 = arith.constant 0 : i32
    return %arg0, %c0_i32, %c0_i32_0 : i32, i32, i32
  }
}

</mosaic_0001>

<bundles_post_ra>
// kernel: tpu_custom_call.1
= control target key start
LH: loop header
LB: loop body
LE: loop exit
PB: predicated region body
PF: predicated region fallthrough
CT: control target
= control target key end

     0   :  { %10 = vsyncpa [#allocation3], 0  ;;  %s1252_s0 = inlined_call_operand.hbm [shape: f32[2,8,128], index: 0, kind: input, shape index: {}]   ;;  %s1253_s1 = inlined_call_operand.hbm [shape: f32[256,128], index: 1, kind: input, shape index: {}]   ;;  %s1254_s2 = inlined_call_operand.vmem [shape: f32[1,128], index: 2, kind: input, shape index: {}]   ;;  %s1255_s3 = inlined_call_operand.hbm [shape: f32[128,128], index: 3, kind: input, shape index: {}]   ;;  %s1256_s4 = inlined_call_operand.vmem [shape: f32[1,128], index: 4, kind: input, shape index: {}]   ;;  %s1257_s5 = inlined_call_operand.hbm [shape: f32[2,1,128], index: 5, kind: output, shape index: {}]  }
   0x1   :  { %12 = vsyncpa [#allocation3 + $0x1], 0 }
   0x2   :  { %13 = vsyncpa [#allocation6], 0 }
   0x3   :  { %14 = vsyncpa [#allocation4], 0 }
   0x4   :  { %16 = vsyncpa [#allocation4 + $0x1], 0  ;;  %s1013_s18 = smov 0   ;;  %s1015_s19 = smov 0  }
   0x5   :  { %s1017_s20 = smov 0   ;;  %s1019_s21 = smov 0  }
   0x6 LB: > { %s1034_s22 = sadd.s32 4294967295, %s972_s21   ;;  %s583_s23 = sadd.s32 4294967294, %s972_s21   ;;  %s972_s21 = sphi %s1019_s21, %s1277_s21   ;;  %s968_s20 = sphi %s1017_s20, %s1276_s20   ;;  %s964_s19 = sphi %s1015_s19, %s1275_s19   ;;  %s960_s18 = sphi %s1013_s18, %s1274_s18  }
   0x7   : > { %p42_p0 = scmp.ne.s32.totalorder %s964_s19, %s960_s18  ;;  %p1258_p1 = scmp.eq.s32.totalorder %s1034_s22, 0 }
   0x8   : > { %p156_p3 = scmp.eq.s32.totalorder %s583_s23, 1  ;;  %p584_p5 = scmp.ge.s32.totalorder %s972_s21, 1 }
   0x9   : > { %p1043_p4 = por %p1258_p1, %p42_p0  ;;  %p163_p7 = scmp.lt.s32.totalorder %s972_s21, 3 }
   0xa   : > { %p1048_p6 = por %p156_p3, %p42_p0  ;;  %s974_s27 = smov [#allocation5]  }
   0xb   : > { %s1261_s24 = scalar_select %p1043_p4, 1, 0 }
   0xc   : > { %s1262_s25 = scalar_select %p1048_p6, 1, 0 }
   0xd   : > { %p1053_p8 = pnand %p584_p5, %p163_p7  ;;  %s175_s28 = sshll.u32 %s974_s27, 4  ;;  %s1057_s28 = int_to_ptr.vmem [resolvable:$true] %s175_s28 }
   0xe   : > { %s975_s30 = smov [#allocation7]   ;;  %s816_s9 = scalar_lea.hbm %s1253_s1, 4096 }
   0xf   : > { %p754_p9 = pneg %p1053_p8  ;;  %s191_s6 = sshll.u32 %s975_s30, 4  ;;  %s1068_s6 = int_to_ptr.vmem [resolvable:$true] %s191_s6 }
  0x10   : > { %p817_p12 = scmp.ne.s32.totalorder %s1253_s1, %s816_s9  ;;  %p823_p5 = scmp.lt.u32.totalorder %s816_s9, %s1253_s1 }
  0x11   : > { %p1064_p11 = pnand %p754_p9, %p1258_p1 }
  0x13   : > { %p818_p13 = pneg %p1064_p11 }
  0x15   : > { %p819_p0 = pnand %p818_p13, %p817_p12 }
  0x17   : > { %p820_p3 = pneg %p819_p0 }
  0x19   : > { %p825_p7 = pnand %p823_p5, %p820_p3 }
  0x1b   : > { %828 = shalt.err (!%p825_p7)
}
  0x1c   : > { %s829_s14 = scalar_lea.vmem %s1057_s28, 4096  ;;  %p837_p2 = scmp.lt.s32.totalorder %s1057_s28, %s1057_s28 }
  0x1d   : > { %p830_p9 = scmp.ne.s32.totalorder %s1057_s28, %s829_s14  ;;  %p838_p12 = scmp.lt.s32.totalorder %s829_s14, %s829_s14 }
  0x1f   : > { %p832_p10 = pnand %p830_p9, %p818_p13  ;;  %p839_p0 = por %p838_p12, %p837_p2 }
  0x21   : > { %p833_p1 = pneg %p832_p10 }
  0x23   : > { %p840_p6 = pnand %p839_p0, %p833_p1 }
  0x25   : > { %843 = shalt.err (!%p840_p6)
}
  0x26   : > { %s976_s15 = smov 128   ;;  %s977_s16 = smov 8  }
  0x27   : > { %757 = dma.hbm_to_vmem [thread:$0]  (!%p1064_p11), %s1253_s1, 4096, %s1057_s28, [#allocation6], %s976_s15, %s976_s15, %s977_s16  }
  0x28   : > { %s844_s7 = scalar_lea.hbm %s1255_s3, 2048 }
  0x29   : > { %p845_p2 = scmp.ne.s32.totalorder %s1255_s3, %s844_s7  ;;  %p851_p10 = scmp.lt.u32.totalorder %s844_s7, %s1255_s3 }
  0x2b   : > { %p847_p1 = pnand %p845_p2, %p818_p13 }
  0x2d   : > { %p848_p6 = pneg %p847_p1 }
  0x2f   : > { %p853_p3 = pnand %p851_p10, %p848_p6 }
  0x31   : > { %856 = shalt.err (!%p853_p3)
}
  0x32   : > { %s857_s28 = scalar_lea.vmem %s1068_s6, 2048  ;;  %p865_p12 = scmp.lt.s32.totalorder %s1068_s6, %s1068_s6 }
  0x33   : > { %p858_p5 = scmp.ne.s32.totalorder %s1068_s6, %s857_s28  ;;  %p866_p0 = scmp.lt.s32.totalorder %s857_s28, %s857_s28 }
  0x35   : > { %p860_p7 = pnand %p858_p5, %p818_p13  ;;  %p867_p2 = por %p866_p0, %p865_p12 }
  0x37   : > { %p861_p9 = pneg %p860_p7 }
  0x39   : > { %p868_p1 = pnand %p867_p2, %p861_p9 }
  0x3b   : > { %871 = shalt.err (!%p868_p1)
}
  0x3c   : > { %760 = dma.hbm_to_vmem [thread:$0]  (!%p1064_p11), %s1255_s3, 2048, %s1068_s6, [#allocation6], %s976_s15, %s976_s15, %s977_s16  }
  0x3d   : > { %s1123_s14 = sadd.s32 1, %s972_s21   ;;  %s29_s29 = sadd.s32 1, %s968_s20 }
  0x3e   : > { %s26_s17 = ssub.s32 %s972_s21, %s1123_s14  ;;  %p36_p13 = scmp.ne.s32.totalorder %s968_s20, %s964_s19 }
  0x3f   : > { %p27_p6 = scmp.eq.s32.totalorder %s26_s17, 0  ;;  %p37_p10 = scmp.eq.s32.totalorder %s972_s21, 0 }
  0x40   : > { %p1265_p3 = scmp.eq.s32.totalorder %s1034_s22, 1  ;;  %p771_p7 = scmp.lt.s32.totalorder %s972_s21, 2 }
  0x41   : > { %s1139_s27 = scalar_select %p27_p6, %s968_s20, %s29_s29  }
  0x42   : > { %p1133_p5 = por %p1265_p3, %p36_p13  ;;  %p38_p9 = por %p37_p10, %p36_p13 }
  0x43   : > { %s208_s30 = sand.u32 1, %s968_s20   ;;  %s589_s6 = sshll.u32 %s972_s21, 7 }
  0x44   : > { %s1266_s23 = scalar_select %p1133_p5, 1, 0 }
  0x45   : > { %s588_s7 = sshll.u32 %s208_s30, 3  ;;  %s1146_s8 = scalar_lea.hbm %s1252_s0, %s589_s6 }
  0x46   : > { %s212_s9 = scalar_lea.vmem [#allocation2], %s588_s7  ;;  %p1150_p11 = pnand %p771_p7, %p38_p9 }
  0x47   : > { %s219_s10 = sshll.u32 %s212_s9, 4  ;;  %s209_s28 = scalar_lea.sflag [#allocation3], %s208_s30  ;;  %s1148_s10 = int_to_ptr.vmem [resolvable:$true] %s219_s10 }
  0x48   : > { %s872_s12 = scalar_lea.hbm %s1146_s8, 128  ;;  %p874_p0 = pneg %p1150_p11 }
  0x49   : > { %p873_p12 = scmp.ne.s32.totalorder %s1146_s8, %s872_s12  ;;  %s877_s17 = scalar_lea.hbm %s1252_s0, 256 }
  0x4a   : > { %p878_p13 = scmp.lt.u32.totalorder %s1146_s8, %s1252_s0  ;;  %p879_p6 = scmp.lt.u32.totalorder %s877_s17, %s872_s12 }
  0x4b   : > { %p875_p2 = pnand %p874_p0, %p873_p12  ;;  %p881_p3 = scmp.lt.u32.totalorder %s872_s12, %s1146_s8 }
  0x4c   : > { %p880_p10 = por %p879_p6, %p878_p13 }
  0x4d   : > { %p876_p1 = pneg %p875_p2 }
  0x4e   : > { %p882_p7 = por %p881_p3, %p880_p10 }
  0x50   : > { %p883_p9 = pnand %p882_p7, %p876_p1 }
  0x52   : > { %886 = shalt.err (!%p883_p9)
}
  0x53   : > { %s887_s30 = scalar_lea.vmem %s1148_s10, 128  ;;  %s978_s15 = smov [#allocation2]  }
  0x54   : > { %p888_p12 = scmp.ne.s32.totalorder %s1148_s10, %s887_s30  ;;  %s892_s16 = sshll.u32 %s978_s15, 4  ;;  %s893_s16 = int_to_ptr.vmem [resolvable:$false] %s892_s16 }
  0x55   : > { %s894_s9 = scalar_lea.vmem %s893_s16, 256  ;;  %p895_p4 = scmp.lt.s32.totalorder %s1148_s10, %s893_s16 }
  0x56   : > { %p890_p2 = pnand %p888_p12, %p874_p0  ;;  %p896_p13 = scmp.lt.s32.totalorder %s894_s9, %s887_s30 }
  0x58   : > { %p891_p5 = pneg %p890_p2  ;;  %p897_p6 = por %p896_p13, %p895_p4 }
  0x5a   : > { %p898_p10 = pnand %p897_p6, %p891_p5 }
  0x5c   : > { %901 = shalt.err (!%p898_p10)
}
  0x5d   : > { %764 = dma.hbm_to_vmem [thread:$0]  (!%p1150_p11), %s1146_s8, 128, %s1148_s10, %s209_s28  }
  0x5e   : > { %228 = sbr.rel (%p1053_p8) target bundleno = 616 (0x268), region = 40  ;;  %s1182_s12 = sand.u32 (!%p1053_p8), 1, %s964_s19  }
  0x5f   : > { %s591_s13 = sshll.u32 (!%p1053_p8), %s1182_s12, 3  ;;  %s231_s29 = scalar_lea.sflag (!%p1053_p8), [#allocation3], %s1182_s12 }
  0x60   : > { %s1186_s17 = scalar_lea.vmem (!%p1053_p8), [#allocation2], %s591_s13  ;;  %p1268_p4 = scmp.ne.s32.totalorder (!%p1053_p8), %s1261_s24, 0 }
  0x65   : > { %947 = dma.done.wait (%p1268_p4), %s231_s29, 128  }
  0x66   : > { %949 = vsyncadd (%p1268_p4), %s231_s29, 4294967168  ;;  %p1269_p5 = scmp.eq.s32.totalorder %s1034_s22, 0 }
  0x68   : > { %951 = dma.done.wait (%p1269_p5), [#allocation6], 6144   ;;  %p1270_p8 = pmov %p1269_p5 }
  0x69   : > { %v288_v0 = vld [vmem:[#allocation5 + $0x80] sm:$0xff]  ;;  %v289_v1 = vld [vmem:[#allocation5 + $0x88] sm:$0xff]  ;;  %v290_v5 = vld [vmem:[#allocation5 + $0x90] sm:$0xff]  ;;  %v979_v53 = vmov 0.0|0.0   ;;  %vm980_vm0 = vmmov 0   ;;  %vm388_vm1 = vcmask 1046528  }
  0x6a   : > { %953 = vsyncadd (%p1270_p8), [#allocation6], 4294961152  ;;  %v272_v2 = vld [vmem:[#allocation5] sm:$0xff]  ;;  %v686_v3 = vpack.c.bf16 %v289_v1, %v288_v0  ;;  %v273_v4 = vld [vmem:[#allocation5 + $0x8] sm:$0xff]  ;;  %718 = vmatprep.subr.bf16.mxu1 %v979_v53  ;;  %s596_s11 = sshll.u32 %s1034_s22, 4  ;;  %s267_s28 = scalar_lea.vmem [#allocation8], %s1182_s12 }
  0x6b   : > { %v291_v6 = vld [vmem:[#allocation5 + $0x98] sm:$0xff]  ;;  %v688_v7 = vpack.c.bf16 %v273_v4, %v272_v2  ;;  %v274_v9 = vld [vmem:[#allocation5 + $0x10] sm:$0xff]  ;;  %v292_v11 = vld [vmem:[#allocation5 + $0xa0] sm:$0xff]  ;;  %s498_s7 = sshll.u32 %s267_s28, 4  ;;  %s1208_s15 = scalar_lea.hbm %s1257_s5, %s596_s11  ;;  %s1210_s7 = int_to_ptr.vmem [resolvable:$true] %s498_s7 }
  0x6c   : > { %v690_v8 = vpack.c.bf16 %v291_v6, %v290_v5  ;;  %v275_v10 = vld [vmem:[#allocation5 + $0x18] sm:$0xff]  ;;  %687 = vmatprep.subr.bf16.mxu0 %v686_v3  ;;  %v293_v12 = vld [vmem:[#allocation5 + $0xa8] sm:$0xff]  ;;  %v276_v15 = vld [vmem:[#allocation5 + $0x20] sm:$0xff]  ;;  %s486_s16 = scalar_lea.sflag [#allocation4], %s1182_s12  ;;  %s902_s9 = scalar_lea.vmem %s1210_s7, 16 }
  0x6d   : > { %689 = vmatpush3.bf16.msra.mxu0 %v688_v7  ;;  %v692_v13 = vpack.c.bf16 %v275_v10, %v274_v9  ;;  %v694_v14 = vpack.c.bf16 %v293_v12, %v292_v11  ;;  %v277_v16 = vld [vmem:[#allocation5 + $0x28] sm:$0xff]  ;;  %v294_v17 = vld [vmem:[#allocation5 + $0xb0] sm:$0xff]  ;;  %v295_v18 = vld [vmem:[#allocation5 + $0xb8] sm:$0xff]  ;;  %p903_p11 = scmp.ne.s32.totalorder %s1210_s7, %s902_s9  ;;  %p1271_p0 = scmp.ne.s32.totalorder %s1266_s23, 0 }
  0x6e   : > { %691 = vmatprep.subr.bf16.mxu0 %v690_v8  ;;  %v696_v19 = vpack.c.bf16 %v277_v16, %v276_v15  ;;  %v698_v20 = vpack.c.bf16 %v295_v18, %v294_v17  ;;  %v278_v21 = vld [vmem:[#allocation5 + $0x30] sm:$0xff]  ;;  %v279_v22 = vld [vmem:[#allocation5 + $0x38] sm:$0xff]  ;;  %v296_v23 = vld [vmem:[#allocation5 + $0xc0] sm:$0xff]  ;;  %v981_v8 = vmov 0.0   ;;  %s982_s22 = smov [#allocation8]  }
  0x6f   : > { %v297_v24 = vld [vmem:[#allocation5 + $0xc8] sm:$0xff]  ;;  %v268_v25 = vld [vmem:[%s1186_s17] sm:$0xff]  ;;  %v700_v27 = vpack.c.bf16 %v279_v22, %v278_v21  ;;  %v280_v29 = vld [vmem:[#allocation5 + $0x40] sm:$0xff]  ;;  %683 = vmatprep.mubr.msk.f32.mxu1 %vm980_vm0, %v981_v8  ;;  %p904_p1 = pnand %p903_p11, %p1271_p0  ;;  %s906_s13 = sshll.u32 %s982_s22, 4  ;;  %s907_s13 = int_to_ptr.vmem [resolvable:$false] %s906_s13 }
  0x70   : > { %v270_v26 = vrot.slane %v268_v25, 1  ;;  %v702_v28 = vpack.c.bf16 %v297_v24, %v296_v23  ;;  %v281_v30 = vld [vmem:[#allocation5 + $0x48] sm:$0xff]  ;;  %v298_v31 = vld [vmem:[#allocation5 + $0xd0] sm:$0xff]  ;;  %v299_v32 = vld [vmem:[#allocation5 + $0xd8] sm:$0xff]  ;;  %s908_s29 = scalar_lea.vmem %s907_s13, 32  ;;  %p909_p7 = scmp.lt.s32.totalorder %s1210_s7, %s907_s13 }
  0x71   : > { %693 = vmatpush3.bf16.msra.mxu0 %v692_v13  ;;  %v704_v33 = vpack.c.bf16 %v281_v30, %v280_v29  ;;  %v706_v34 = vpack.c.bf16 %v299_v32, %v298_v31  ;;  %v282_v35 = vld [vmem:[#allocation5 + $0x50] sm:$0xff]  ;;  %v283_v36 = vld [vmem:[#allocation5 + $0x58] sm:$0xff]  ;;  %v300_v37 = vld [vmem:[#allocation5 + $0xe0] sm:$0xff]  ;;  %p905_p3 = pneg %p904_p1  ;;  %p910_p9 = scmp.lt.s32.totalorder %s908_s29, %s902_s9 }
  0x72   : > { %695 = vmatprep.subr.bf16.mxu0 %v694_v14  ;;  %368 = vmatprep.mubr.f32.mxu0 %v270_v26  ;;  %v301_v38 = vld [vmem:[#allocation5 + $0xe8] sm:$0xff]  ;;  %v708_v39 = vpack.c.bf16 %v283_v36, %v282_v35  ;;  %v284_v41 = vld [vmem:[#allocation5 + $0x60] sm:$0xff]  ;;  %v302_v43 = vld [vmem:[#allocation5 + $0xf0] sm:$0xff] }
  0x73   : > { %v710_v40 = vpack.c.bf16 %v301_v38, %v300_v37  ;;  %v285_v42 = vld [vmem:[#allocation5 + $0x68] sm:$0xff]  ;;  %v303_v44 = vld [vmem:[#allocation5 + $0xf8] sm:$0xff]  ;;  %v286_v47 = vld [vmem:[#allocation5 + $0x70] sm:$0xff]  ;;  %p911_p12 = por %p910_p9, %p909_p7 }
  0x74   : > { %v712_v45 = vpack.c.bf16 %v285_v42, %v284_v41  ;;  %v714_v46 = vpack.c.bf16 %v303_v44, %v302_v43  ;;  %v287_v48 = vld [vmem:[#allocation5 + $0x78] sm:$0xff]  ;;  %v396_v50 = vld [vmem:[#allocation7] sm:$0xff]  ;;  %v397_v51 = vld [vmem:[#allocation7 + $0x8] sm:$0xff] }
  0x75   : > { %697 = vmatpush3.bf16.msra.mxu0 %v696_v19  ;;  %v716_v49 = vpack.c.bf16 %v287_v48, %v286_v47  ;;  %v719_v52 = vpack.c.bf16 %v397_v51, %v396_v50  ;;  %v398_v54 = vld [vmem:[#allocation7 + $0x10] sm:$0xff]  ;;  %v399_v55 = vld [vmem:[#allocation7 + $0x18] sm:$0xff]  ;;  %v400_v57 = vld [vmem:[#allocation7 + $0x20] sm:$0xff]  ;;  %p912_p2 = pnand %p911_p12, %p905_p3 }
  0x76   : > { %699 = vmatprep.subr.bf16.mxu0 %v698_v20  ;;  %v722_v56 = vpack.c.bf16 %v399_v55, %v398_v54  ;;  %v401_v58 = vld [vmem:[#allocation7 + $0x28] sm:$0xff]  ;;  %v402_v60 = vld [vmem:[#allocation7 + $0x30] sm:$0xff]  ;;  %v403_v61 = vld [vmem:[#allocation7 + $0x38] sm:$0xff] }
  0x77   : > { %720 = vmatpush3.bf16.msra.mxu1 %v719_v52  ;;  %v725_v59 = vpack.c.bf16 %v401_v58, %v400_v57  ;;  %v728_v62 = vpack.c.bf16 %v403_v61, %v402_v60  ;;  %v404_v63 = vld [vmem:[#allocation7 + $0x40] sm:$0xff]  ;;  %v405_v0 = vld [vmem:[#allocation7 + $0x48] sm:$0xff]  ;;  %v406_v2 = vld [vmem:[#allocation7 + $0x50] sm:$0xff] }
  0x78   : > { %721 = vmatprep.subr.bf16.mxu1 %v979_v53  ;;  %v731_v1 = vpack.c.bf16 %v405_v0, %v404_v63  ;;  %v407_v3 = vld [vmem:[#allocation7 + $0x58] sm:$0xff]  ;;  %v408_v5 = vld [vmem:[#allocation7 + $0x60] sm:$0xff]  ;;  %v409_v6 = vld [vmem:[#allocation7 + $0x68] sm:$0xff] }
  0x79   : > { %701 = vmatpush3.bf16.msra.mxu0 %v700_v27  ;;  %v734_v4 = vpack.c.bf16 %v407_v3, %v406_v2  ;;  %v737_v7 = vpack.c.bf16 %v409_v6, %v408_v5  ;;  %v410_v9 = vld [vmem:[#allocation7 + $0x70] sm:$0xff]  ;;  %v411_v10 = vld [vmem:[#allocation7 + $0x78] sm:$0xff] }
  0x7a   : > { %703 = vmatprep.subr.bf16.mxu0 %v702_v28  ;;  %v740_v11 = vpack.c.bf16 %v411_v10, %v410_v9  ;;  %v594_v14 = vld [vmem:[%s1254_s2] ss:$0 sm:$0xff] }
  0x7b   : > { %723 = vmatpush3.bf16.msra.mxu1 %v722_v56  ;;  %v412_v29 = vld [vmem:[%s1256_s4] sm:$0x1] }
  0x7c   : > { %724 = vmatprep.subr.bf16.mxu1 %v979_v53  ;;  %v413_v30 = vmul.f32 7.0, %v412_v29 }
  0x7d   : > { %705 = vmatpush3.bf16.msra.mxu0 %v704_v33 }
  0x7e   : > { %707 = vmatprep.subr.bf16.mxu0 %v706_v34 }
  0x7f   : > { %726 = vmatpush3.bf16.msra.mxu1 %v725_v59 }
  0x80   : > { %727 = vmatprep.subr.bf16.mxu1 %v979_v53 }
  0x81   : > { %709 = vmatpush3.bf16.msra.mxu0 %v708_v39 }
  0x82   : > { %711 = vmatprep.subr.bf16.mxu0 %v710_v40 }
  0x83   : > { %729 = vmatpush3.bf16.msra.mxu1 %v728_v62 }
  0x84   : > { %730 = vmatprep.subr.bf16.mxu1 %v979_v53 }
  0x85   : > { %713 = vmatpush3.bf16.msra.mxu0 %v712_v45 }
  0x86   : > { %715 = vmatprep.subr.bf16.mxu0 %v714_v46 }
  0x87   : > { %732 = vmatpush3.bf16.msra.mxu1 %v731_v1 }
  0x88   : > { %733 = vmatprep.subr.bf16.mxu1 %v979_v53 }
  0x89   : > { %717 = vmatpush3.bf16.msra.mxu0 %v716_v49 }
  0x8b   : > { %735 = vmatpush3.bf16.msra.mxu1 %v734_v4 }
  0x8c   : > { %369 = vmatmul.mubr.f32.vlgmr.msra.gmra.mrb[0].mxu0 %v268_v25  ;;  %736 = vmatprep.subr.bf16.mxu1 %v979_v53 }
  0x8f   : > { %738 = vmatpush3.bf16.msra.mxu1 %v737_v7 }
  0x90   : > { %739 = vmatprep.subr.bf16.mxu1 %v979_v53 }
  0x93   : > { %741 = vmatpush3.bf16.msra.mxu1 %v740_v11 }
 0x15f   : > { %v631_v12 = vpop.f32.mrb[0].mxu0 }
 0x160   : > { %v632_v13 = vpop.f32.mrb[1].mxu0 }
 0x161   : > { %v633_v15 = vadd.f32 %v632_v13, %v631_v12 }
 0x163   : > { %v381_v16 = vadd.f32 %v633_v15, %v594_v14 }
 0x165   : > { %v383_v17 = vmin.f32 %v381_v16, 0.0  ;;  %vm382_vm2 = vcmp.gt.f32.partialorder %v381_v16, 0.0 }
 0x167   : > { %v384_v18 = vmul.f32 1.442695, %v383_v17 }
 0x169   : > { %814 = vpow2.f32 %v384_v18 }
 0x173   : > { %v815_v19 = vpop.eup %814 }
 0x174   : > { %v595_v20 = vadd.f32 -1.0, %v815_v19 }
 0x176   : > { %v387_v21 = vsel %vm382_vm2, %v381_v16, %v595_v20 }
 0x177   : > { %v389_v22 = vsel %vm388_vm1, %v387_v21, 0.0 }
 0x178   : > { %v390_v23 = vrot.slane %v389_v22, 4 }
 0x17a   : > { %v391_v24 = vadd.f32 %v390_v23, %v389_v22 }
 0x17c   : > { %v392_v25 = vrot.slane %v391_v24, 2 }
 0x17e   : > { %v393_v26 = vadd.f32 %v392_v25, %v391_v24 }
 0x180   : > { %v394_v27 = vrot.slane %v393_v26, 1 }
 0x182   : > { %v395_v28 = vadd.f32 %v394_v27, %v393_v26 }
 0x184   : > { %684 = vmatmul.mubr.f32.vlgmr.msra.gmra.mrb[0].mxu1 %v395_v28 }
 0x257   : > { %v480_v31 = vpop.f32.mrb[0].mxu1 }
 0x258   : > { %v481_v32 = vadd.f32 %v480_v31, %v413_v30  ;;  %v685_v33 = vpop.f32.mrb[1].mxu1 }
 0x25a   : > { %484 = vst [vmem:[%s267_s28] sm:$0x1] %v481_v32 }
 0x25b   : > { %915 = shalt.err (!%p912_p2)
}
 0x25c   : > { %s916_s12 = scalar_lea.hbm %s1208_s15, 16  ;;  %s920_s26 = scalar_lea.hbm %s1257_s5, 32 }
 0x25d   : > { %p917_p13 = scmp.ne.s32.totalorder %s1208_s15, %s916_s12  ;;  %p921_p4 = scmp.lt.u32.totalorder %s1208_s15, %s1257_s5 }
 0x25e   : > { %p922_p5 = scmp.lt.u32.totalorder %s920_s26, %s916_s12  ;;  %p924_p11 = scmp.lt.u32.totalorder %s916_s12, %s1208_s15 }
 0x25f   : > { %p918_p6 = pnand %p917_p13, %p1271_p0 }
 0x260   : > { %p923_p8 = por %p922_p5, %p921_p4 }
 0x261   : > { %p919_p10 = pneg %p918_p6 }
 0x262   : > { %p925_p1 = por %p924_p11, %p923_p8 }
 0x264   : > { %p926_p3 = pnand %p925_p1, %p919_p10 }
 0x266   : > { %929 = shalt.err (!%p926_p3)
}
 0x267   : > { %752 = dma.vmem_to_hbm [thread:$0]  (%p1271_p0), %s1210_s7, 16, %s1208_s15, %s486_s16  }
 0x268 PF: > { %s510_s11 = sand.u32 1, %s960_s18   ;;  %p1272_p7 = scmp.ne.s32.totalorder %s1262_s25, 0 }
 0x269   : > { %p1273_p9 = scmp.ge.s32.totalorder %s972_s21, 2  ;;  %s511_s28 = scalar_lea.sflag [#allocation4], %s510_s11 }
 0x26b   : > { %p766_p12 = pnand %p1273_p9, %p1272_p7 }
 0x26d   : > { %955 = dma.done.wait (!%p766_p12), %s511_s28, 16  }
 0x26e   : > { %957 = vsyncadd (!%p766_p12), %s511_s28, 4294967280  ;;  %p19_p2 = scmp.ge.s32.totalorder %s1123_s14, 4   ;;  %s1274_s18 = smov %s964_s19 }
 0x26f   : > { %s1275_s19 = smov %s968_s20  ;;  %s1276_s20 = smov %s1139_s27 }
 0x270   : > { %s1277_s21 = smov %s1123_s14  ;;  %21 = sbr.rel (!%p19_p2) target bundleno = 6 (0x6), region = 93 }
 0x277   :  { %515 = vsyncpa [#allocation3], 1 }
 0x278   :  { %517 = vsyncpa [#allocation3 + $0x1], 1 }
 0x279   :  { %518 = vsyncpa [#allocation6], 1 }
 0x27a   :  { %519 = vsyncpa [#allocation4], 1 }
 0x27b   :  { %521 = vsyncpa [#allocation4 + $0x1], 1 }

</bundles_post_ra>
